<compile_context>
chip_gen: v5e
topology: v5e:2x2
jax: 0.10.0
libtpu: 0.0.40
codegen_flags: <defaults>
</compile_context>

<pallas_src>
import functools

import jax
import jax.numpy as jnp
from jax.experimental import pallas as pl
from jax.experimental.pallas import tpu as pltpu

ALPHA = 10000.0
GAMMA = 0.0
EPSILON = 0.001


def _round_up(x, m):
    return ((x + m - 1) // m) * m


def _make_kernel(n_valid, alpha, gamma, epsilon):
    """Returns a kernel closed over the true row count and loss constants."""

    def kernel(logits_ref, target_ref, feat_ref, out_ref, acc_ref):
        i = pl.program_id(0)

        @pl.when(i == 0)
        def _():
            acc_ref[...] = jnp.zeros_like(acc_ref)

        logits = logits_ref[...].astype(jnp.float32)   # [T, C]
        tgt = target_ref[...]                          # [T, 1] int32
        feat = feat_ref[...].astype(jnp.float32)       # [T, 1]
        T, C = logits.shape

        # log-sum-exp over classes (lane axis), numerically stable.
        m = jnp.max(logits, axis=1, keepdims=True)               # [T, 1]
        sum_ez = jnp.sum(jnp.exp(logits - m), axis=1, keepdims=True)
        lse = jnp.log(sum_ez) + m                                 # [T, 1]

        # logit at the target class via one-hot select (TPU needs >=2D iota).
        classes = jax.lax.broadcasted_iota(jnp.int32, (T, C), 1)
        onehot = (classes == tgt).astype(jnp.float32)             # [T, C]
        logit_t = jnp.sum(logits * onehot, axis=1, keepdims=True) # [T, 1]

        # cross entropy (reduction='none', no class weights)
        ce = lse - logit_t                                        # [T, 1]
        p = jnp.exp(-ce)                                          # softmax[target]

        # grads = sum_c |softmax - onehot| == 2 * (1 - softmax[target])
        grads = 2.0 * (1.0 - p)                                   # [T, 1]

        # ib weighting
        ib = alpha / (grads * feat + epsilon)                     # [T, 1]

        # focal modulation: (1 - p)**gamma * ce * ib  (gamma=0 -> factor 1)
        loss = ce * ib
        if gamma != 0.0:
            loss = jnp.power(1.0 - p, gamma) * loss

        # mask rows that only exist due to padding to the tile size.
        row = i * T + jax.lax.broadcasted_iota(jnp.int32, (T, 1), 0)
        loss = jnp.where(row < n_valid, loss, 0.0)

        acc_ref[...] += jnp.sum(loss)

        @pl.when(i == pl.num_programs(0) - 1)
        def _():
            out_ref[...] = acc_ref[...] / jnp.float32(n_valid)

    return kernel


def ib_focal_loss_pallas(logits, target, features, *, alpha=ALPHA,
                         gamma=GAMMA, epsilon=EPSILON, tile_n=512):
    """Mean IB focal loss. logits [N, C] (f32 or bf16), target [N] int,
    features [N] or [N, 1] float."""
    N, C = logits.shape

    # Sublane-aligned tile over rows; for small N just use one aligned tile.
    # tile_n=512 keeps per-buffer logits bytes modest (fits v7x 64 MiB VMEM
    # with double buffering for realistic C); raise it on v5e/v6e if wanted.
    tile = min(int(tile_n), _round_up(N, 8))
    tile = _round_up(tile, 8)
    n_pad = _round_up(N, tile)
    pad = n_pad - N

    logits_p = jnp.pad(logits, ((0, pad), (0, 0)))
    target_p = jnp.pad(target.reshape(-1).astype(jnp.int32),
                       (0, pad)).reshape(n_pad, 1)
    feat_p = jnp.pad(features.reshape(-1).astype(jnp.float32),
                     (0, pad), constant_values=1.0).reshape(n_pad, 1)

    grid = (n_pad // tile,)

    out = pl.pallas_call(
        _make_kernel(N, float(alpha), float(gamma), float(epsilon)),
        out_shape=jax.ShapeDtypeStruct((1, 1), jnp.float32),
        grid_spec=pltpu.PrefetchScalarGridSpec(
            num_scalar_prefetch=0,
            grid=grid,
            in_specs=[
                pl.BlockSpec((tile, C), lambda i: (i, 0)),
                pl.BlockSpec((tile, 1), lambda i: (i, 0)),
                pl.BlockSpec((tile, 1), lambda i: (i, 0)),
            ],
            out_specs=pl.BlockSpec((1, 1), lambda i: (0, 0)),
            scratch_shapes=[pltpu.VMEM((1, 1), jnp.float32)],
        ),
        compiler_params=pltpu.CompilerParams(
            dimension_semantics=("arbitrary",)),
    )(logits_p, target_p, feat_p)
    return out[0, 0]


def ib_focal_loss_ref(logits, target, features, *, alpha=ALPHA,
                      gamma=GAMMA, epsilon=EPSILON):
    """Pure-JAX reference reproducing the PyTorch forward."""
    N, C = logits.shape
    lg = logits.astype(jnp.float32)
    sm = jax.nn.softmax(lg, axis=1)
    oh = jax.nn.one_hot(target, C, dtype=jnp.float32)
    grads = jnp.sum(jnp.abs(sm - oh), axis=1)
    ib = grads * features.reshape(-1).astype(jnp.float32)
    ib = alpha / (ib + epsilon)
    lse = jax.scipy.special.logsumexp(lg, axis=1)
    ce = lse - jnp.take_along_axis(lg, target[:, None], axis=1)[:, 0]
    p = jnp.exp(-ce)
    return jnp.mean(jnp.power(1.0 - p, gamma) * ce * ib)


if __name__ == "__main__":
    key = jax.random.PRNGKey(0)
    k1, k2, k3 = jax.random.split(key, 3)

    # Small shapes consistent with the module: batch of 8 samples, 16 classes.
    N, C = 8, 16
    logits = jax.random.normal(k1, (N, C), dtype=jnp.float32)
    target = jax.random.randint(k2, (N,), 0, C, dtype=jnp.int32)
    features = jax.random.uniform(k3, (N, 1), dtype=jnp.float32) + 0.1

    out = ib_focal_loss_pallas(logits, target, features)
    out = jax.block_until_ready(out)
    ref = ib_focal_loss_ref(logits, target, features)
    assert jnp.allclose(out, ref, rtol=1e-4, atol=1e-4), (out, ref)

    # Second check: non-aligned N with a tiny tile, exercising the multi-tile
    # accumulator path and the row-padding mask.
    N2 = 20
    k4, k5, k6 = jax.random.split(jax.random.PRNGKey(1), 3)
    logits2 = jax.random.normal(k4, (N2, C), dtype=jnp.float32)
    target2 = jax.random.randint(k5, (N2,), 0, C, dtype=jnp.int32)
    features2 = jax.random.uniform(k6, (N2,), dtype=jnp.float32) + 0.1

    out2 = ib_focal_loss_pallas(logits2, target2, features2, tile_n=8)
    out2 = jax.block_until_ready(out2)
    ref2 = ib_focal_loss_ref(logits2, target2, features2)
    assert jnp.allclose(out2, ref2, rtol=1e-4, atol=1e-4), (out2, ref2)

    print("KERNEL_OK")
</pallas_src>

<mosaic_0001>
module attributes {stable_mosaic.version = 11 : i64} {
  func.func @kernel(%arg0: i32, %arg1: memref<8x16xf32, #tpu.memory_space<vmem>>, %arg2: memref<8x1xi32, #tpu.memory_space<vmem>>, %arg3: memref<8x1xf32, #tpu.memory_space<vmem>>, %arg4: memref<1x1xf32, #tpu.memory_space<vmem>>, %arg5: memref<1x1xf32, #tpu.memory_space<vmem>>) attributes {dimension_semantics = [#tpu.dimension_semantics<arbitrary>], iteration_bounds = array<i64: 1>, scalar_prefetch = 0 : i64, scratch_operands = 1 : i64, tpu.core_type = #tpu.core_type<tc>, window_params = [{transform_indices = @transform_0, window_bounds = array<i64: 8, 16>}, {transform_indices = @transform_1, window_bounds = array<i64: 8, 1>}, {transform_indices = @transform_2, window_bounds = array<i64: 8, 1>}, {pipeline_mode = #tpu.pipeline_mode<synchronous>, transform_indices = @transform_3, window_bounds = array<i64: 1, 1>}]} {
    %c0_i32 = arith.constant 0 : i32
    %0 = arith.cmpi eq, %arg0, %c0_i32 : i32
    %1 = arith.extui %0 : i1 to i32
    %c0_i32_0 = arith.constant 0 : i32
    %2 = arith.cmpi ne, %1, %c0_i32_0 : i32
    scf.if %2 {
      %cst_22 = arith.constant 0.000000e+00 : f32
      %56 = vector.broadcast %cst_22 : f32 to vector<1x1xf32>
      %c0_23 = arith.constant 0 : index
      %c0_24 = arith.constant 0 : index
      %57 = vector.load %arg5[%c0_23, %c0_24] : memref<1x1xf32, #tpu.memory_space<vmem>>, vector<1x1xf32>
      tpu.vector_store %arg5[%c0_23, %c0_24], %56 {strides = array<i32>} : memref<1x1xf32, #tpu.memory_space<vmem>>, vector<1x1xf32>,
    } else {
    }
    %c0 = arith.constant 0 : index
    %c0_1 = arith.constant 0 : index
    %3 = vector.load %arg1[%c0, %c0_1] : memref<8x16xf32, #tpu.memory_space<vmem>>, vector<8x16xf32>
    %c0_2 = arith.constant 0 : index
    %c0_3 = arith.constant 0 : index
    %4 = vector.load %arg2[%c0_2, %c0_3] : memref<8x1xi32, #tpu.memory_space<vmem>>, vector<8x1xi32>
    %c0_4 = arith.constant 0 : index
    %c0_5 = arith.constant 0 : index
    %5 = vector.load %arg3[%c0_4, %c0_5] : memref<8x1xf32, #tpu.memory_space<vmem>>, vector<8x1xf32>
    %cst = arith.constant dense<0xFF800000> : vector<8xf32>
    %6 = vector.multi_reduction <maximumf>, %3, %cst [1] : vector<8x16xf32> to vector<8xf32>
    %7 = vector.shape_cast %6 : vector<8xf32> to vector<8x1xf32>
    %8 = vector.broadcast %7 : vector<8x1xf32> to vector<8x16xf32>
    %9 = arith.subf %3, %8 : vector<8x16xf32>
    %10 = math.exp %9 : vector<8x16xf32>
    %cst_6 = arith.constant dense<0.000000e+00> : vector<8xf32>
    %11 = vector.multi_reduction <add>, %10, %cst_6 [1] : vector<8x16xf32> to vector<8xf32>
    %12 = vector.shape_cast %11 : vector<8xf32> to vector<8x1xf32>
    %13 = math.log %12 : vector<8x1xf32>
    %14 = arith.addf %13, %7 : vector<8x1xf32>
    %15 = tpu.iota {dimensions = array<i32: 1>} : vector<8x16xi32>
    %16 = vector.broadcast %4 : vector<8x1xi32> to vector<8x16xi32>
    %17 = arith.cmpi eq, %15, %16 : vector<8x16xi32>
    %18 = arith.extui %17 : vector<8x16xi1> to vector<8x16xi32>
    %19 = arith.sitofp %18 : vector<8x16xi32> to vector<8x16xf32>
    %20 = arith.mulf %3, %19 : vector<8x16xf32>
    %cst_7 = arith.constant dense<0.000000e+00> : vector<8xf32>
    %21 = vector.multi_reduction <add>, %20, %cst_7 [1] : vector<8x16xf32> to vector<8xf32>
    %22 = vector.shape_cast %21 : vector<8xf32> to vector<8x1xf32>
    %23 = arith.subf %14, %22 : vector<8x1xf32>
    %cst_8 = arith.constant 0.000000e+00 : f32
    %24 = vector.broadcast %cst_8 : f32 to vector<8x1xf32>
    %25 = arith.subf %24, %23 : vector<8x1xf32>
    %26 = math.exp %25 : vector<8x1xf32>
    %cst_9 = arith.constant 1.000000e+00 : f32
    %27 = vector.broadcast %cst_9 : f32 to vector<8x1xf32>
    %28 = arith.subf %27, %26 : vector<8x1xf32>
    %cst_10 = arith.constant 2.000000e+00 : f32
    %29 = vector.broadcast %cst_10 : f32 to vector<8x1xf32>
    %30 = arith.mulf %29, %28 : vector<8x1xf32>
    %31 = arith.mulf %30, %5 : vector<8x1xf32>
    %cst_11 = arith.constant 1.000000e-03 : f32
    %32 = vector.broadcast %cst_11 : f32 to vector<8x1xf32>
    %33 = arith.addf %31, %32 : vector<8x1xf32>
    %cst_12 = arith.constant 1.000000e+04 : f32
    %34 = vector.broadcast %cst_12 : f32 to vector<8x1xf32>
    %35 = arith.divf %34, %33 : vector<8x1xf32>
    %36 = arith.mulf %23, %35 : vector<8x1xf32>
    %c8_i32 = arith.constant 8 : i32
    %37 = arith.muli %arg0, %c8_i32 : i32
    %38 = tpu.iota {dimensions = array<i32: 0>} : vector<8x1xi32>
    %39 = vector.broadcast %37 : i32 to vector<8x1xi32>
    %40 = arith.addi %39, %38 : vector<8x1xi32>
    %c8_i32_13 = arith.constant 8 : i32
    %41 = vector.broadcast %c8_i32_13 : i32 to vector<8x1xi32>
    %42 = arith.cmpi slt, %40, %41 : vector<8x1xi32>
    %cst_14 = arith.constant 0.000000e+00 : f32
    %43 = vector.broadcast %cst_14 : f32 to vector<8x1xf32>
    %44 = arith.select %42, %36, %43 : vector<8x1xi1>, vector<8x1xf32>
    %c0_15 = arith.constant 0 : index
    %c0_16 = arith.constant 0 : index
    %45 = vector.load %arg5[%c0_15, %c0_16] : memref<1x1xf32, #tpu.memory_space<vmem>>, vector<1x1xf32>
    %46 = vector.shape_cast %44 : vector<8x1xf32> to vector<1x8x1xf32>
    %cst_17 = arith.constant dense<0.000000e+00> : vector<1xf32>
    %47 = vector.multi_reduction <add>, %46, %cst_17 [1, 2] : vector<1x8x1xf32> to vector<1xf32>
    %48 = vector.shape_cast %47 : vector<1xf32> to vector<1x1x1xf32>
    %49 = vector.extract %48[0, 0, 0] : f32 from vector<1x1x1xf32>
    %50 = vector.broadcast %49 : f32 to vector<1x1xf32>
    %51 = arith.addf %45, %50 : vector<1x1xf32>
    %c0_18 = arith.constant 0 : index
    %c0_19 = arith.constant 0 : index
    %52 = vector.load %arg5[%c0_18, %c0_19] : memref<1x1xf32, #tpu.memory_space<vmem>>, vector<1x1xf32>
    tpu.vector_store %arg5[%c0_18, %c0_19], %51 {strides = array<i32>} : memref<1x1xf32, #tpu.memory_space<vmem>>, vector<1x1xf32>,
    %c0_i32_20 = arith.constant 0 : i32
    %53 = arith.cmpi eq, %arg0, %c0_i32_20 : i32
    %54 = arith.extui %53 : i1 to i32
    %c0_i32_21 = arith.constant 0 : i32
    %55 = arith.cmpi ne, %54, %c0_i32_21 : i32
    scf.if %55 {
      %c0_22 = arith.constant 0 : index
      %c0_23 = arith.constant 0 : index
      %56 = vector.load %arg5[%c0_22, %c0_23] : memref<1x1xf32, #tpu.memory_space<vmem>>, vector<1x1xf32>
      %cst_24 = arith.constant 8.000000e+00 : f32
      %57 = vector.broadcast %cst_24 : f32 to vector<1x1xf32>
      %58 = arith.divf %56, %57 : vector<1x1xf32>
      %c0_25 = arith.constant 0 : index
      %c0_26 = arith.constant 0 : index
      %59 = vector.load %arg4[%c0_25, %c0_26] : memref<1x1xf32, #tpu.memory_space<vmem>>, vector<1x1xf32>
      tpu.vector_store %arg4[%c0_25, %c0_26], %58 {strides = array<i32>} : memref<1x1xf32, #tpu.memory_space<vmem>>, vector<1x1xf32>,
    } else {
    }
    return
  }
  func.func @transform_0(%arg0: i32) -> (i32, i32) {
    %c0_i32 = arith.constant 0 : i32
    %c0_i32_0 = arith.constant 0 : i32
    return %arg0, %c0_i32 : i32, i32
  }
  func.func @transform_1(%arg0: i32) -> (i32, i32) {
    %c0_i32 = arith.constant 0 : i32
    %c0_i32_0 = arith.constant 0 : i32
    return %arg0, %c0_i32 : i32, i32
  }
  func.func @transform_2(%arg0: i32) -> (i32, i32) {
    %c0_i32 = arith.constant 0 : i32
    %c0_i32_0 = arith.constant 0 : i32
    return %arg0, %c0_i32 : i32, i32
  }
  func.func @transform_3(%arg0: i32) -> (i32, i32) {
    %c0_i32 = arith.constant 0 : i32
    %c0_i32_0 = arith.constant 0 : i32
    %c0_i32_1 = arith.constant 0 : i32
    return %c0_i32, %c0_i32_0 : i32, i32
  }
}

</mosaic_0001>

<bundles_post_ra>
// kernel: tpu_custom_call.1
= control target key start
LH: loop header
LB: loop body
LE: loop exit
PB: predicated region body
PF: predicated region fallthrough
CT: control target
= control target key end

     0   :  { %vm24_vm0 = vcmask 130048   ;;  %s211_s0 = inlined_call_operand.vmem [shape: f32[8,16], index: 0, kind: input, shape index: {}]   ;;  %s212_s1 = inlined_call_operand.vmem [shape: s32[8,1], index: 1, kind: input, shape index: {}]   ;;  %s213_s2 = inlined_call_operand.vmem [shape: f32[8,1], index: 2, kind: input, shape index: {}]   ;;  %s214_s3 = inlined_call_operand.hbm [shape: f32[1,1], index: 3, kind: output, shape index: {}]  }
   0x1   :  { %v21_v0 = vld [vmem:[%s211_s0] sm:$0xff] }
   0x2   :  { %8 = vsyncpa [#allocation4], 0  ;;  %v25_v1 = vsel %vm24_vm0, %v21_v0, -inf  ;;  %v169_v2 = vmov 0   ;;  %v22_v3 = vld [vmem:[%s212_s1] sm:$0xff]  ;;  %vm19_vm1 = vcmask 0   ;;  %v37_v10 = vlaneseq }
   0x3   :  { %132 = vset.pattern.permute.xlu0 %v169_v2  ;;  %v170_v4 = vmov 0.0   ;;  %v23_v26 = vld [vmem:[%s213_s2] sm:$0xff]  ;;  %vm81_vm7 = vcmask 7168   ;;  %v171_v50 = vmov 8.0   ;;  %s172_s16 = smov [#allocation3]   ;;  %s116_s20 = sshll.u32 %s214_s3, 4  ;;  %s117_s20 = int_to_ptr.hbm [resolvable:$true] %s116_s20 }
   0x4   :  { %26 = vmax.xlane.f32.xlu0 %v25_v1  ;;  %20 = vst.msk [vmem:[#allocation2] sm:$0x1] %vm19_vm1, %v170_v4  ;;  %v38_v11 = vand.u32 127, %v37_v10  ;;  %s114_s17 = sshll.u32 %s172_s16, 4  ;;  %s115_s17 = int_to_ptr.vmem [resolvable:$true] %s114_s17 }
   0xb   :  { %v80_v54 = vld [vmem:[#allocation2] sm:$0x1] }
  0x18   :  { %40 = vperm.xlu0 %132, %v22_v3  }
  0x77   :  { %v27_v5 = vpop.xlane.xlu0 %26 }
  0x78   :  { %v28_v6 = vsub.f32 %v21_v0, %v27_v5 }
  0x7a   :  { %v29_v7 = vmul.f32 1.442695, %v28_v6 }
  0x7c   :  { %133 = vpow2.f32 %v29_v7 }
  0x82   :  { %v134_v8 = vpop.eup %133 }
  0x83   :  { %v31_v9 = vsel %vm24_vm0, %v134_v8, 0.0 }
  0x84   :  { %32 = vadd.xlane.f32.xlu1 %v31_v9 }
  0x8a   :  { %v41_v12 = vpop.permute.xlu0 %40 }
  0x8b   :  { %vm42_vm2 = vcmp.eq.s32.totalorder %v38_v11, %v41_v12 }
  0x8c   :  { %v125_v13 = vsel %vm42_vm2, 1.0, %v170_v4 }
  0x8d   :  { %v45_v14 = vmul.f32 %v125_v13, %v21_v0 }
  0x8f   :  { %v46_v15 = vsel %vm24_vm0, %v45_v14, 0.0 }
  0x90   :  { %47 = vadd.xlane.f32.xlu1 %v46_v15 }
  0xf7   :  { %v33_v16 = vpop.xlane.xlu1 %32 }
  0xf8   :  { %135 = vlog2.f32 %v33_v16 }
  0xfe   :  { %v136_v17 = vpop.eup %135 }
  0xff   :  { %v35_v18 = vmul.f32 0.6931472, %v136_v17 }
 0x101   :  { %v36_v19 = vadd.f32 %v35_v18, %v27_v5 }
 0x103   :  { %v48_v20 = vpop.xlane.xlu1 %47 }
 0x104   :  { %v49_v21 = vsub.f32 %v36_v19, %v48_v20 }
 0x106   :  { %v50_v22 = vsub.f32 0.0, %v49_v21 }
 0x108   :  { %v51_v23 = vmul.f32 1.442695, %v50_v22 }
 0x10a   :  { %137 = vpow2.f32 %v51_v23 }
 0x110   :  { %v138_v24 = vpop.eup %137 }
 0x111   :  { %v53_v25 = vsub.f32 1.0, %v138_v24 }
 0x113   :  { %v54_v27 = vmul.f32 2.0, %v53_v25 }
 0x115   :  { %v55_v28 = vmul.f32 %v54_v27, %v23_v26 }
 0x117   :  { %v56_v29 = vadd.f32 0.001, %v55_v28 }
 0x119   :  { %139 = vrcp.f32 %v56_v29  ;;  %v68_v33 = vand.u32 2147483648, %v56_v29  ;;  %v66_v35 = vand.u32 2147483647, %v56_v29  ;;  %vm62_vm4 = vweird.f32 %v56_v29 }
 0x11a   :  { %141 = vrcp.f32 %v171_v50 }
 0x11b   :  { %v69_v37 = vor.u32 1.1754944e-38, %v68_v33  ;;  %vm67_vm6 = vcmp.eq.f32.partialorder %v66_v35, 8.507059e+37 }
 0x11f   :  { %v140_v30 = vpop.eup %139 }
 0x120   :  { %v58_v31 = vmul.f32 %v140_v30, %v56_v29  ;;  %vm63_vm3 = vweird.f32 %v140_v30  ;;  %v142_v51 = vpop.eup %141 }
 0x121   :  { %vm64_vm5 = vmor %vm62_vm4, %vm63_vm3  ;;  %v101_v52 = vmul.f32 8.0, %v142_v51  ;;  %vm105_vm8 = vweird.f32 %v142_v51 }
 0x122   :  { %v59_v32 = vsub.f32 1.0, %v58_v31 }
 0x123   :  { %v102_v53 = vsub.f32 1.0, %v101_v52 }
 0x124   :  { %v60_v34 = vmul.f32 %v140_v30, %v59_v32 }
 0x125   :  { %v103_v56 = vmul.f32 %v142_v51, %v102_v53 }
 0x126   :  { %v61_v36 = vadd.f32 %v140_v30, %v60_v34 }
 0x127   :  { %v104_v58 = vadd.f32 %v142_v51, %v103_v56 }
 0x128   :  { %v65_v38 = vsel %vm64_vm5, %v140_v30, %v61_v36 }
 0x129   :  { %v70_v39 = vsel %vm67_vm6, %v69_v37, %v65_v38  ;;  %v106_v59 = vsel %vm105_vm8, %v142_v51, %v104_v58 }
 0x12a   :  { %v71_v40 = vmul.f32 10000.0, %v70_v39 }
 0x12c   :  { %v72_v41 = vmul.f32 %v71_v40, %v49_v21 }
 0x12e   :  { %v82_v42 = vsel %vm81_vm7, %v72_v41, 0.0 }
 0x12f   :  { %83 = vadd.xlane.f32.xlu2 %v82_v42 }
 0x1a2   :  { %v84_v43 = vpop.xlane.xlu2 %83 }
 0x1a3   :  { %v85_v44 = vrot.slane %v84_v43, 4 }
 0x1a5   :  { %v86_v45 = vadd.f32 %v85_v44, %v84_v43 }
 0x1a7   :  { %v87_v46 = vrot.slane %v86_v45, 2 }
 0x1a9   :  { %v88_v47 = vadd.f32 %v87_v46, %v86_v45 }
 0x1ab   :  { %v89_v48 = vrot.slane %v88_v47, 1 }
 0x1ad   :  { %v90_v49 = vadd.f32 %v89_v48, %v88_v47 }
 0x1af   :  { %126 = vpush %v90_v49 }
 0x1e0   :  { %s127_s2 = spop %126 }
 0x1e1   :  { %v92_v55 = vstv %s127_s2 }
 0x1e2   :  { %v93_v57 = vadd.f32 %v92_v55, %v80_v54 }
 0x1e4   :  { %95 = vst.msk [vmem:[#allocation2] sm:$0x1] %vm19_vm1, %v93_v57 }
 0x1eb   :  { %v99_v60 = vld [vmem:[#allocation2] sm:$0x1] }
 0x1ec   :  { %v107_v61 = vmul.f32 %v106_v59, %v99_v60 }
 0x1ee   :  { %108 = vst.msk [vmem:[#allocation3] sm:$0x1] %vm19_vm1, %v107_v61 }
 0x1ef   :  { %119 = dma.vmem_to_hbm [thread:$0]  %s115_s17, 16, %s117_s20, [#allocation4]  }
 0x1f0   :  { %167 = dma.done.wait [#allocation4], 16  }
 0x1f1   :  { %168 = vsyncadd [#allocation4], 4294967280 }
 0x1f2   :  { %124 = vsyncpa [#allocation4], 1 }

</bundles_post_ra>
